<compile_context>
chip_gen: v7x
topology: tpu7x:2x2x1
jax: 0.10.0
libtpu: 0.0.40
codegen_flags: <defaults>
</compile_context>

<pallas_src>
from functools import partial

import jax
import jax.numpy as jnp
from jax import lax
from jax.experimental import pallas as pl
from jax.experimental.pallas import tpu as pltpu


def _round_up(x, m):
    return ((x + m - 1) // m) * m


def _round_down(x, m):
    return (x // m) * m


def _physical_vmem_bytes():
    """Per-TensorCore physical VMEM; conservative fallback is v7x's 64 MiB."""
    try:
        info = pltpu.get_tpu_info()
        for name in ("vmem_capacity_bytes", "vmem_bytes", "vmem_size_bytes"):
            val = getattr(info, name, None)
            if isinstance(val, int) and val > 0:
                return val
    except Exception:
        pass
    return 64 * 1024 * 1024


def _masked_max_kernel(x_ref, o_ref, *, rows_per_block, lane_width,
                       chunks_per_batch, vocab_size, pad_size):
    """One block of the flattened [rows, lane_width] logits slab.

    x_ref: (TP, rows_per_block, lane_width) per-rank logits
    o_ref: (rows_per_block, lane_width)

    MAX-reduce over the TP axis (the reduce-scatter reduction), then force the
    padded tail of the *global* vocab to finfo(dtype).min.
    """
    m = jnp.max(x_ref[...], axis=0)                 # (R, W) elementwise max

    if pad_size == 0:                               # static: no masking at all
        o_ref[...] = m
        return

    threshold = vocab_size - pad_size               # first padded vocab column
    c_pad = threshold // lane_width                 # first chunk with padding
    neg = jnp.finfo(m.dtype).min                    # == torch.finfo(dtype).min

    j = pl.program_id(0)
    row0 = j * rows_per_block

    pow2_chunks = (chunks_per_batch & (chunks_per_batch - 1)) == 0

    def _masked_write():
        rows = row0 + lax.broadcasted_iota(jnp.int32, m.shape, 0)
        lanes = lax.broadcasted_iota(jnp.int32, m.shape, 1)
        if pow2_chunks:                              # AND instead of integer mod
            chunk = jnp.bitwise_and(rows, chunks_per_batch - 1)
        else:
            chunk = rows % chunks_per_batch
        col = chunk * lane_width + lanes             # global vocab column
        o_ref[...] = jnp.where(col < threshold, m, neg)

    if rows_per_block >= chunks_per_batch:
        # Every block spans at least one full batch row-group, so it always
        # contains the padded tail: mask unconditionally (static decision).
        _masked_write()
    else:
        # Only blocks touching the tail chunks of a batch need the mask.
        needs_mask = (row0 % chunks_per_batch) + rows_per_block > c_pad

        @pl.when(needs_mask)
        def _():
            _masked_write()

        @pl.when(jnp.logical_not(needs_mask))
        def _():
            o_ref[...] = m


def masked_logits_forward(logits_per_rank, pad_size, *,
                          lane_width=None, block_rows=None):
    """logits_per_rank: [TP, B, V] float array. Returns [B, V]."""
    tp, b, v = logits_per_rank.shape
    assert v % 128 == 0, "padded vocab dim must be a multiple of 128"
    dtype = logits_per_rank.dtype
    dtype_bytes = jnp.dtype(dtype).itemsize

    # dtype-aware sublane alignment (packed rows): f32 -> 8, bf16 -> 16, i8 -> 32
    align = 8 * max(1, 4 // dtype_bytes)

    # Lane-dense width: largest nice multiple of 128 that divides V, preferring
    # ones that make chunks_per_batch a power of two (cheap mask arithmetic).
    if lane_width is None:
        cands = [w for w in (4096, 2048, 1024, 512, 256, 128) if v % w == 0]
        pow2 = [w for w in cands if ((v // w) & ((v // w) - 1)) == 0]
        lane_width = (pow2 or cands)[0]
    assert v % lane_width == 0 and lane_width % 128 == 0
    chunks_per_batch = v // lane_width
    rows_total = b * chunks_per_batch

    phys_vmem = _physical_vmem_bytes()
    vmem_budget = int(phys_vmem * 0.85)             # scoped limit must stay legal

    bytes_per_row_in = tp * lane_width * dtype_bytes
    bytes_per_row_total = (tp + 1) * lane_width * dtype_bytes   # in + out

    if block_rows is None:
        # ~8 MiB input per step on 64 MiB-VMEM chips (v7x), ~12 MiB when 128 MiB
        # is available (v5e/v6e): amortizes the ~0.35 us fixed per-step cost.
        block_budget = 8 * 1024 * 1024 if phys_vmem <= 64 * 1024 * 1024 \
            else 12 * 1024 * 1024
        max_rows = max(align, _round_down(block_budget // bytes_per_row_in, align))
        # VMEM legality: double-buffered input + output must fit the budget.
        vmem_rows = _round_down(vmem_budget // (2 * bytes_per_row_total), align)
        max_rows = max(align, min(max_rows, max(align, vmem_rows)))

        if rows_total <= max_rows:
            if rows_total >= 2 * align:
                # Split into >=2 steps: both v7x TensorCores get work and the
                # DMA/compute pipeline has something to overlap.
                block_rows = min(_round_up((rows_total + 1) // 2, align),
                                 rows_total)
            else:
                block_rows = rows_total      # tiny slab: single step
        else:
            # Prefer an exact aligned divisor near the budget; otherwise take an
            # aligned block and let the cdiv grid clip the remainder block.
            block_rows = 0
            lo = max(align, _round_down(max_rows // 2, align))
            for r in range(_round_down(max_rows, align), lo - 1, -align):
                if rows_total % r == 0:
                    block_rows = r
                    break
            if block_rows == 0:
                block_rows = _round_down(max_rows, align)

    block_rows = min(block_rows, rows_total)
    assert block_rows >= 1
    grid = pl.cdiv(rows_total, block_rows)           # remainder block is clipped

    # Contiguous view: [TP, B, V] -> [TP, B*(V/W), W] (free under jit).
    x = logits_per_rank.reshape(tp, rows_total, lane_width)

    kernel = partial(
        _masked_max_kernel,
        rows_per_block=block_rows,
        lane_width=lane_width,
        chunks_per_batch=chunks_per_batch,
        vocab_size=v,
        pad_size=pad_size,
    )

    # Double-buffered input + output footprint, clamped to physical VMEM.
    vmem_usage = 2 * block_rows * bytes_per_row_total
    vmem_limit = int(min(vmem_budget,
                         max(int(1.3 * vmem_usage) + (1 << 20),
                             16 * 1024 * 1024)))

    out = pl.pallas_call(
        kernel,
        out_shape=jax.ShapeDtypeStruct((rows_total, lane_width), dtype),
        grid_spec=pltpu.PrefetchScalarGridSpec(
            num_scalar_prefetch=0,
            grid=(grid,),
            in_specs=[
                pl.BlockSpec((tp, block_rows, lane_width), lambda j: (0, j, 0)),
            ],
            out_specs=pl.BlockSpec((block_rows, lane_width), lambda j: (j, 0)),
        ),
        compiler_params=pltpu.CompilerParams(
            dimension_semantics=("parallel",),
            vmem_limit_bytes=vmem_limit,
        ),
    )(x)

    return out.reshape(b, v)


def _reference(logits_per_rank, pad_size):
    """Pure-JAX reference of reduce_scatter(MAX) -> mask -> gather."""
    m = jnp.max(logits_per_rank, axis=0)            # (B, V)
    v = m.shape[-1]
    keep = jnp.arange(v) < (v - pad_size)
    neg = jnp.finfo(m.dtype).min
    return jnp.where(keep[None, :], m, neg)


if __name__ == "__main__":
    key = jax.random.PRNGKey(0)
    k0, k1, k2 = jax.random.split(key, 3)

    # --- case 1: 4 virtual TP ranks, batch 2, padded vocab 256 (auto config) ---
    TP, B, V = 4, 2, 256
    PAD_SIZE = 7
    logits_per_rank = jax.random.normal(k0, (TP, B, V), dtype=jnp.float32)
    fwd = jax.jit(partial(masked_logits_forward, pad_size=PAD_SIZE))
    out = jax.block_until_ready(fwd(logits_per_rank))
    ref = _reference(logits_per_rank, PAD_SIZE)
    assert out.shape == (B, V)
    assert jnp.allclose(out, ref), "Pallas kernel mismatch vs reference (case 1)"

    # --- case 2: exercises the runtime pl.when mask fast-path (divisible grid) ---
    TP2, B2, V2, PAD2 = 2, 2, 2048, 5
    logits2 = jax.random.normal(k1, (TP2, B2, V2), dtype=jnp.float32)
    out2 = jax.block_until_ready(
        masked_logits_forward(logits2, PAD2, lane_width=128, block_rows=8))
    ref2 = _reference(logits2, PAD2)
    assert jnp.allclose(out2, ref2), "Pallas kernel mismatch vs reference (case 2)"

    # --- case 3: exercises the cdiv grid with a clipped remainder block ---
    TP3, B3, V3, PAD3 = 2, 3, 1280, 100
    logits3 = jax.random.normal(k2, (TP3, B3, V3), dtype=jnp.float32)
    out3 = jax.block_until_ready(
        masked_logits_forward(logits3, PAD3, lane_width=128, block_rows=16))
    ref3 = _reference(logits3, PAD3)
    assert jnp.allclose(out3, ref3), "Pallas kernel mismatch vs reference (case 3)"

    print("KERNEL_OK")
</pallas_src>

<mosaic_0001>
module attributes {stable_mosaic.version = 11 : i64} {
  func.func @_masked_max_kernel(%arg0: i32, %arg1: memref<4x2x256xf32, #tpu.memory_space<vmem>>, %arg2: memref<2x256xf32, #tpu.memory_space<vmem>>) attributes {dimension_semantics = [#tpu.dimension_semantics<parallel>], iteration_bounds = array<i64: 1>, scalar_prefetch = 0 : i64, scratch_operands = 0 : i64, tpu.core_type = #tpu.core_type<tc>, window_params = [{transform_indices = @transform_0, window_bounds = array<i64: 4, 2, 256>}, {transform_indices = @transform_1, window_bounds = array<i64: 2, 256>}]} {
    %c0 = arith.constant 0 : index
    %c0_0 = arith.constant 0 : index
    %c0_1 = arith.constant 0 : index
    %0 = vector.load %arg1[%c0, %c0_0, %c0_1] : memref<4x2x256xf32, #tpu.memory_space<vmem>>, vector<4x2x256xf32>
    %cst = arith.constant dense<0xFF800000> : vector<2x256xf32>
    %1 = vector.multi_reduction <maximumf>, %0, %cst [0] : vector<4x2x256xf32> to vector<2x256xf32>
    %c2_i32 = arith.constant 2 : i32
    %2 = arith.muli %arg0, %c2_i32 : i32
    %3 = tpu.iota {dimensions = array<i32: 0>} : vector<2x256xi32>
    %4 = vector.broadcast %2 : i32 to vector<2x256xi32>
    %5 = arith.addi %4, %3 : vector<2x256xi32>
    %6 = tpu.iota {dimensions = array<i32: 1>} : vector<2x256xi32>
    %c0_i32 = arith.constant 0 : i32
    %7 = vector.broadcast %c0_i32 : i32 to vector<2x256xi32>
    %8 = arith.andi %5, %7 : vector<2x256xi32>
    %c256_i32 = arith.constant 256 : i32
    %9 = vector.broadcast %c256_i32 : i32 to vector<2x256xi32>
    %10 = arith.muli %8, %9 : vector<2x256xi32>
    %11 = arith.addi %10, %6 : vector<2x256xi32>
    %c249_i32 = arith.constant 249 : i32
    %12 = vector.broadcast %c249_i32 : i32 to vector<2x256xi32>
    %13 = arith.cmpi slt, %11, %12 : vector<2x256xi32>
    %cst_2 = arith.constant -3.40282347E+38 : f32
    %14 = vector.broadcast %cst_2 : f32 to vector<2x256xf32>
    %15 = arith.select %13, %1, %14 : vector<2x256xi1>, vector<2x256xf32>
    %c0_3 = arith.constant 0 : index
    %c0_4 = arith.constant 0 : index
    %16 = vector.load %arg2[%c0_3, %c0_4] : memref<2x256xf32, #tpu.memory_space<vmem>>, vector<2x256xf32>
    tpu.vector_store %arg2[%c0_3, %c0_4], %15 {strides = array<i32>} : memref<2x256xf32, #tpu.memory_space<vmem>>, vector<2x256xf32>,
    return
  }
  func.func @transform_0(%arg0: i32) -> (i32, i32, i32) {
    %c0_i32 = arith.constant 0 : i32
    %c0_i32_0 = arith.constant 0 : i32
    %c0_i32_1 = arith.constant 0 : i32
    return %c0_i32, %arg0, %c0_i32_0 : i32, i32, i32
  }
  func.func @transform_1(%arg0: i32) -> (i32, i32) {
    %c0_i32 = arith.constant 0 : i32
    %c0_i32_0 = arith.constant 0 : i32
    return %arg0, %c0_i32 : i32, i32
  }
}

</mosaic_0001>

<bundles_post_ra>
// kernel: masked_logits_forward.1
= control target key start
LH: loop header
LB: loop body
LE: loop exit
PB: predicated region body
PF: predicated region fallthrough
CT: control target
= control target key end

     0   :  { %6 = vsyncpa [#allocation3], 0  ;;  %s175_s0 = inlined_call_operand.hbm [shape: f32[4,2,256], index: 0, kind: input, shape index: {}]   ;;  %s176_s1 = inlined_call_operand.hbm [shape: f32[2,256], index: 1, kind: output, shape index: {}]  }
   0x1   :  { %7 = vsyncpa [#allocation4], 0  ;;  %s136_s6 = smov [#allocation2]   ;;  %s88_s10 = scalar_lea.hbm %s175_s0, 256 }
   0x2   :  { %s13_s7 = sshll.u32 %s136_s6, 4  ;;  %p89_p0 = scmp.ne.s32.totalorder %s175_s0, %s88_s10  ;;  %s14_s7 = int_to_ptr.vmem [resolvable:$true] %s13_s7 }
   0x3   :  { %p92_p1 = scmp.lt.u32.totalorder %s88_s10, %s175_s0 }
   0x5   :  { %p94_p2 = pnand %p92_p1, %p89_p0 }
   0x7   :  { %97 = shalt.err (!%p94_p2)
}
   0x8   :  { %s98_s15 = scalar_lea.vmem %s14_s7, 256  ;;  %p103_p4 = scmp.lt.s32.totalorder %s14_s7, %s14_s7 }
   0x9   :  { %p99_p3 = scmp.ne.s32.totalorder %s14_s7, %s98_s15  ;;  %p104_p5 = scmp.lt.s32.totalorder %s98_s15, %s98_s15 }
   0xb   :  { %p105_p6 = por %p104_p5, %p103_p4 }
   0xd   :  { %p106_p7 = pnand %p105_p6, %p99_p3 }
   0xf   :  { %109 = shalt.err (!%p106_p7)
}
  0x10   :  { %s137_s16 = smov 64   ;;  %s138_s17 = smov 4  }
  0x11   :  { %19 = dma.hbm_to_vmem [thread:$0]  %s175_s0, 256, %s14_s7, [#allocation3], %s137_s16, %s137_s16, %s138_s17  }
  0x12   :  { %132 = dma.done.wait [#allocation3], 256  }
  0x13   :  { %133 = vsyncadd [#allocation3], 4294967040  ;;  %vm27_vm0 = vcmask 1041408   ;;  %vm28_vm1 = vcmask 1043458   ;;  %v37_v0 = vlaneseq  ;;  %v139_v1 = vmov 1983009808  }
  0x14   :  { %v44_v2 = vunpack.c.l.s4 %v139_v1  ;;  %vm29_vm2 = vmor %vm28_vm1, %vm27_vm0  ;;  %v23_v6 = vld [vmem:[#allocation2] sm:$0xf]  ;;  %v24_v7 = vld [vmem:[#allocation2 + $0x4] sm:$0xf]  ;;  %s140_s0 = smov [#allocation5]  }
  0x15   :  { %v38_v3 = vand.u32 127, %v37_v0  ;;  %v47_v5 = vshrl.u32 %v37_v0, 7  ;;  %v25_v8 = vld [vmem:[#allocation2 + $0x8] sm:$0xf]  ;;  %v26_v9 = vld [vmem:[#allocation2 + $0xc] sm:$0xf] }
  0x16   :  { %v45_v4 = vunpack.c.0.s8 %v44_v2  ;;  %v30_v10 = vsel %vm29_vm2, %v23_v6, -inf  ;;  %v31_v11 = vsel %vm29_vm2, %v24_v7, -inf  ;;  %v32_v12 = vsel %vm29_vm2, %v25_v8, -inf  ;;  %s73_s20 = sshll.u32 %s140_s0, 4  ;;  %s74_s20 = int_to_ptr.vmem [resolvable:$true] %s73_s20 }
  0x17   :  { %v33_v13 = vsel %vm29_vm2, %v26_v9, -inf  ;;  %v34_v14 = vmax.f32 %v30_v10, %v31_v11  ;;  %v39_v17 = vadd.s32 128, %v38_v3  ;;  %s110_s21 = scalar_lea.vmem %s74_s20, 64  ;;  %p115_p9 = scmp.lt.s32.totalorder %s74_s20, %s74_s20 }
  0x18   :  { %v35_v15 = vmax.f32 %v32_v12, %v33_v13  ;;  %v48_v16 = vsub.s32 %v45_v4, %v47_v5  ;;  %p111_p8 = scmp.ne.s32.totalorder %s74_s20, %s110_s21  ;;  %p116_p10 = scmp.lt.s32.totalorder %s110_s21, %s110_s21 }
  0x19   :  { %vm41_vm3 = vcmp.lt.s32.totalorder %v39_v17, 249 }
  0x1a   :  { %v36_v18 = vmax.f32 %v34_v14, %v35_v15  ;;  %p117_p11 = por %p116_p10, %p115_p9 }
  0x1c   :  { %v49_v19 = vrot.slane %v36_v18, %v48_v16  ;;  %p118_p12 = pnand %p117_p11, %p111_p8 }
  0x1e   :  { %v50_v20 = vcombine.high %v49_v19, %v49_v19 }
  0x20   :  { %v54_v21 = vsel %vm41_vm3, %v50_v20, -3.4028235e+38 }
  0x21   :  { %v57_v22 = vcombine.low %v49_v19, %v54_v21 }
  0x23   :  { %82 = vst.sshfl [vmem:[#allocation5] sm:$0x33 pattern:$0x76325410] %v57_v22 }
  0x24   :  { %121 = shalt.err (!%p118_p12)
}
  0x25   :  { %s122_s24 = scalar_lea.hbm %s176_s1, 64 }
  0x26   :  { %p123_p13 = scmp.ne.s32.totalorder %s176_s1, %s122_s24  ;;  %p126_p0 = scmp.lt.u32.totalorder %s122_s24, %s176_s1 }
  0x28   :  { %p128_p1 = pnand %p126_p0, %p123_p13 }
  0x2a   :  { %131 = shalt.err (!%p128_p1)
}
  0x2b   :  { %76 = dma.vmem_to_hbm [thread:$0]  %s74_s20, 64, %s176_s1, [#allocation4]  }
  0x2c   :  { %134 = dma.done.wait [#allocation4], 64  }
  0x2d   :  { %135 = vsyncadd [#allocation4], 4294967232 }
  0x2e   :  { %80 = vsyncpa [#allocation3], 1 }
  0x2f   :  { %81 = vsyncpa [#allocation4], 1 }

</bundles_post_ra>
